<compile_context>
chip_gen: v7x
topology: tpu7x:2x2x1
jax: 0.10.0
libtpu: 0.0.40
codegen_flags: <defaults>
</compile_context>

<pallas_src>
import functools
import math

import jax
import jax.numpy as jnp
from jax import lax
from jax.experimental import pallas as pl
from jax.experimental.pallas import tpu as pltpu

_MASK_VALUE = -1e30  # large finite negative -> no inf-inf NaN in online softmax


def _pick_tile(dim, target, aligns=(128, 8)):
    """Largest tile <= target dividing `dim`, preferring the strictest alignment.

    Falls back to the full axis when no aligned divisor exists (small / odd dims).
    """
    if dim <= target:
        return dim
    for align in aligns:
        for t in range(min(target, dim), align - 1, -1):
            if dim % t == 0 and t % align == 0:
                return t
    return dim


def _clamp_vmem(nbytes):
    return int(min(max(nbytes, 16 << 20), 48 << 20))


# ---------------------------------------------------------------------------
# Tiled projection matmul: y = x @ w   (x: (M, K), w: (K, N) pre-transposed)
# ---------------------------------------------------------------------------
def _matmul_kernel(x_ref, w_ref, o_ref, acc_ref):
    @pl.when(pl.program_id(2) == 0)
    def _():
        acc_ref[...] = jnp.zeros_like(acc_ref)

    acc_ref[...] += jnp.dot(x_ref[...], w_ref[...],
                            preferred_element_type=jnp.float32)

    @pl.when(pl.program_id(2) == pl.num_programs(2) - 1)
    def _():
        o_ref[...] = acc_ref[...].astype(o_ref.dtype)


def _project(x, w, *, tm=512, tn=512, tk=1024):
    M, K = x.shape
    _, N = w.shape
    tm = _pick_tile(M, tm, aligns=(16, 8))
    tn = _pick_tile(N, tn, aligns=(128, 8))
    tk = _pick_tile(K, tk, aligns=(128, 8))
    elt = x.dtype.itemsize
    vmem_limit = _clamp_vmem(2 * (tm * tk + tk * tn + tm * tn) * elt
                             + tm * tn * 4 + (4 << 20))
    return pl.pallas_call(
        _matmul_kernel,
        out_shape=jax.ShapeDtypeStruct((M, N), x.dtype),
        grid_spec=pltpu.PrefetchScalarGridSpec(
            num_scalar_prefetch=0,
            grid=(M // tm, N // tn, K // tk),
            in_specs=[pl.BlockSpec((tm, tk), lambda i, j, k: (i, k)),
                      pl.BlockSpec((tk, tn), lambda i, j, k: (k, j))],
            out_specs=pl.BlockSpec((tm, tn), lambda i, j, k: (i, j)),
            scratch_shapes=[pltpu.VMEM((tm, tn), jnp.float32)]),
        compiler_params=pltpu.CompilerParams(
            dimension_semantics=("parallel", "parallel", "arbitrary"),
            vmem_limit_bytes=vmem_limit),
        cost_estimate=pl.CostEstimate(
            flops=2 * M * N * K, transcendentals=0,
            bytes_accessed=int((M * K + K * N + M * N) * elt)),
    )(x, w)


# ---------------------------------------------------------------------------
# Flash attention over head-split tensors: q (B,H,T,dh), k/v (B,H,S,dh)
# Softmax scale is already folded into the Q projection.
# ---------------------------------------------------------------------------
def _flash_kernel(q_ref, k_ref, v_ref, o_ref, m_ref, l_ref, acc_ref,
                  *, is_causal, tq, tk):
    qi = pl.program_id(1)
    ki = pl.program_id(2)

    @pl.when(ki == 0)
    def _():
        m_ref[...] = jnp.full_like(m_ref, -jnp.inf)
        l_ref[...] = jnp.zeros_like(l_ref)
        acc_ref[...] = jnp.zeros_like(acc_ref)

    def _step(apply_mask):
        q = q_ref[0]                    # (H, tq, dh) -- scale already in Wq
        k = k_ref[0]                    # (H, tk, dh)
        v = v_ref[0]                    # (H, tk, dh)

        # heads batched on the MXU; f32 accumulation, no operand upcast
        s = jnp.einsum('hqd,hkd->hqk', q, k,
                       preferred_element_type=jnp.float32)       # (H, tq, tk)

        if apply_mask:
            # only built for blocks that straddle the diagonal
            row = qi * tq + lax.broadcasted_iota(jnp.int32, (tq, tk), 0)
            col = ki * tk + lax.broadcasted_iota(jnp.int32, (tq, tk), 1)
            s = jnp.where((col <= row)[None, :, :], s, _MASK_VALUE)

        m_prev = m_ref[...]                                      # (H, tq, 1)
        m_new = jnp.maximum(m_prev, jnp.max(s, axis=-1, keepdims=True))
        alpha = jnp.exp(m_prev - m_new)
        p = jnp.exp(s - m_new)                                   # (H, tq, tk)

        l_ref[...] = alpha * l_ref[...] + jnp.sum(p, axis=-1, keepdims=True)
        acc_ref[...] = alpha * acc_ref[...] + jnp.einsum(
            'hqk,hkd->hqd', p.astype(v.dtype), v,
            preferred_element_type=jnp.float32)                  # (H, tq, dh)
        m_ref[...] = m_new

    if is_causal:
        q_first = qi * tq
        q_last = q_first + tq - 1
        kv_first = ki * tk
        kv_last = kv_first + tk - 1

        # fully below / on the diagonal: plain unmasked path
        @pl.when(kv_last <= q_first)
        def _():
            _step(False)

        # straddles the diagonal: masked path
        @pl.when(jnp.logical_and(kv_last > q_first, kv_first <= q_last))
        def _():
            _step(True)

        # kv_first > q_last: fully above diagonal -> skip compute entirely
        # (the clamped K/V index_map also elides the DMA for these blocks)
    else:
        _step(False)

    @pl.when(ki == pl.num_programs(2) - 1)
    def _():
        # exact divide: once per q block, off the hot path; approx reciprocal
        # was not accurate enough for the test tolerance.
        o_ref[0] = (acc_ref[...] / l_ref[...]).astype(o_ref.dtype)


def _flash_attention(q, k, v, *, is_causal, q_block=512, kv_block=512):
    B, H, T, dh = q.shape
    S = k.shape[2]
    tq = _pick_tile(T, q_block, aligns=(16, 8))
    tk = _pick_tile(S, kv_block, aligns=(128, 8))

    kernel = functools.partial(_flash_kernel, is_causal=is_causal, tq=tq, tk=tk)

    if is_causal:
        # clamp: fully-masked kv blocks re-request the last needed block, so the
        # Pallas pipeline elides their DMA (no K/V HBM traffic above diagonal).
        def kv_map(b, qi, ki):
            last_needed = (qi * tq + tq - 1) // tk
            return (b, 0, jnp.minimum(ki, last_needed), 0)
    else:
        def kv_map(b, qi, ki):
            return (b, 0, ki, 0)

    elt = q.dtype.itemsize
    block_bytes = (2 * H * tq * dh + 2 * H * tk * dh) * elt      # q+out, k+v
    scratch_bytes = H * tq * (dh + 2 * 128) * 4                  # acc + m/l (lane pad)
    vmem_limit = _clamp_vmem(2 * block_bytes + scratch_bytes + (4 << 20))

    return pl.pallas_call(
        kernel,
        out_shape=jax.ShapeDtypeStruct((B, H, T, dh), q.dtype),
        grid_spec=pltpu.PrefetchScalarGridSpec(
            num_scalar_prefetch=0,
            grid=(B, T // tq, S // tk),
            in_specs=[
                pl.BlockSpec((1, H, tq, dh), lambda b, qi, ki: (b, 0, qi, 0)),
                pl.BlockSpec((1, H, tk, dh), kv_map),
                pl.BlockSpec((1, H, tk, dh), kv_map),
            ],
            out_specs=pl.BlockSpec((1, H, tq, dh),
                                   lambda b, qi, ki: (b, 0, qi, 0)),
            scratch_shapes=[pltpu.VMEM((H, tq, 1), jnp.float32),   # m
                            pltpu.VMEM((H, tq, 1), jnp.float32),   # l
                            pltpu.VMEM((H, tq, dh), jnp.float32)]  # acc
        ),
        compiler_params=pltpu.CompilerParams(
            dimension_semantics=("parallel", "parallel", "arbitrary"),
            vmem_limit_bytes=vmem_limit),
        cost_estimate=pl.CostEstimate(
            flops=4 * B * H * T * S * dh,
            transcendentals=B * H * T * S,
            bytes_accessed=int((q.size + k.size + v.size + B * H * T * dh) * elt)),
    )(q, k, v)


# ---------------------------------------------------------------------------
# Full module forward (eval mode: is_causal=False, dropout=0)
# ---------------------------------------------------------------------------
def flash_causal_mha(q, k, v, wq, wk, wv, wo, *, num_heads, is_causal=False,
                     q_block=512, kv_block=512):
    """q: (B,T,D), k/v: (B,S,D).  w*: (D,D) pre-transposed to [in, out]."""
    B, T, D = q.shape
    S = k.shape[1]
    dh = D // num_heads

    # Fold 1/sqrt(dh) into Wq once: free, and removes a per-kv-step multiply
    # plus any low-precision pre-MXU scaling of q.
    wq_scaled = (wq * (1.0 / math.sqrt(dh))).astype(wq.dtype)

    qp = _project(q.reshape(B * T, D), wq_scaled).reshape(B, T, num_heads, dh)
    kp = _project(k.reshape(B * S, D), wk).reshape(B, S, num_heads, dh)
    vp = _project(v.reshape(B * S, D), wv).reshape(B, S, num_heads, dh)

    # head-split layout (B, H, seq, dh); plain XLA plumbing (see TODO at top)
    qp = qp.transpose(0, 2, 1, 3)
    kp = kp.transpose(0, 2, 1, 3)
    vp = vp.transpose(0, 2, 1, 3)

    attn = _flash_attention(qp, kp, vp, is_causal=is_causal,
                            q_block=q_block, kv_block=kv_block)   # (B,H,T,dh)
    attn = attn.transpose(0, 2, 1, 3).reshape(B * T, D)
    return _project(attn, wo).reshape(B, T, D)


# ---------------------------------------------------------------------------
# Reference + test harness
# ---------------------------------------------------------------------------
def _xavier_uniform(key, out_features, in_features, gain=1.0, dtype=jnp.float32):
    bound = gain * math.sqrt(6.0 / (in_features + out_features))
    return jax.random.uniform(key, (out_features, in_features), dtype,
                              minval=-bound, maxval=bound)


def _reference(q, k, v, wq, wk, wv, wo, num_heads, is_causal=False):
    B, T, D = q.shape
    S = k.shape[1]
    dh = D // num_heads
    qp = (q @ wq).reshape(B, T, num_heads, dh).transpose(0, 2, 1, 3)
    kp = (k @ wk).reshape(B, S, num_heads, dh).transpose(0, 2, 1, 3)
    vp = (v @ wv).reshape(B, S, num_heads, dh).transpose(0, 2, 1, 3)
    s = jnp.einsum("bhtd,bhsd->bhts", qp, kp) / math.sqrt(dh)
    if is_causal:
        mask = jnp.tril(jnp.ones((T, S), dtype=bool))
        s = jnp.where(mask, s, -jnp.inf)
    p = jax.nn.softmax(s, axis=-1)
    o = jnp.einsum("bhts,bhsd->bhtd", p, vp)
    o = o.transpose(0, 2, 1, 3).reshape(B, T, D)
    return o @ wo


if __name__ == "__main__":
    B, T, S, D, H = 2, 8, 8, 32, 4

    key = jax.random.PRNGKey(0)
    kq, kk, kv, kwq, kwk, kwv, kwo = jax.random.split(key, 7)

    q = jax.random.normal(kq, (B, T, D), jnp.float32)
    k = jax.random.normal(kk, (B, S, D), jnp.float32)
    v = jax.random.normal(kv, (B, S, D), jnp.float32)

    # PyTorch Linear weights are [out, in]; pre-transpose so kernels do x @ W.
    Wq = _xavier_uniform(kwq, D, D).T
    Wk = _xavier_uniform(kwk, D, D).T
    Wv = _xavier_uniform(kwv, D, D).T
    Wo = _xavier_uniform(kwo, D, D).T

    # eval-mode path (is_causal=False, dropout=0), matches module.forward in eval()
    out = jax.block_until_ready(
        flash_causal_mha(q, k, v, Wq, Wk, Wv, Wo, num_heads=H, is_causal=False))
    ref = _reference(q, k, v, Wq, Wk, Wv, Wo, H, is_causal=False)
    assert out.shape == (B, T, D)
    assert jnp.allclose(out, ref, atol=2e-3, rtol=2e-3), \
        f"eval max abs err {jnp.max(jnp.abs(out - ref))}"

    # causal (training-mode mask, dropout still 0) path
    out_c = jax.block_until_ready(
        flash_causal_mha(q, k, v, Wq, Wk, Wv, Wo, num_heads=H, is_causal=True))
    ref_c = _reference(q, k, v, Wq, Wk, Wv, Wo, H, is_causal=True)
    assert jnp.allclose(out_c, ref_c, atol=2e-3, rtol=2e-3), \
        f"causal max abs err {jnp.max(jnp.abs(out_c - ref_c))}"

    # multi-block online-softmax path (several q/kv tiles, causal block skip,
    # clamped K/V index_map, masked vs unmasked branch split)
    T2 = S2 = 32
    q2 = jax.random.normal(kq, (1, T2, D), jnp.float32)
    k2 = jax.random.normal(kk, (1, S2, D), jnp.float32)
    v2 = jax.random.normal(kv, (1, S2, D), jnp.float32)
    out_m = jax.block_until_ready(
        flash_causal_mha(q2, k2, v2, Wq, Wk, Wv, Wo, num_heads=H,
                         is_causal=True, q_block=8, kv_block=8))
    ref_m = _reference(q2, k2, v2, Wq, Wk, Wv, Wo, H, is_causal=True)
    assert jnp.allclose(out_m, ref_m, atol=2e-3, rtol=2e-3), \
        f"multi-block max abs err {jnp.max(jnp.abs(out_m - ref_m))}"

    # non-causal multi-block path as well
    out_e = jax.block_until_ready(
        flash_causal_mha(q2, k2, v2, Wq, Wk, Wv, Wo, num_heads=H,
                         is_causal=False, q_block=8, kv_block=8))
    ref_e = _reference(q2, k2, v2, Wq, Wk, Wv, Wo, H, is_causal=False)
    assert jnp.allclose(out_e, ref_e, atol=2e-3, rtol=2e-3), \
        f"multi-block eval max abs err {jnp.max(jnp.abs(out_e - ref_e))}"

    print("KERNEL_OK")
</pallas_src>

<mosaic_0001>
module attributes {stable_mosaic.version = 11 : i64} {
  func.func @_matmul_kernel(%arg0: i32, %arg1: i32, %arg2: i32, %arg3: memref<16x32xf32, #tpu.memory_space<vmem>>, %arg4: memref<32x32xf32, #tpu.memory_space<vmem>>, %arg5: memref<16x32xf32, #tpu.memory_space<vmem>>, %arg6: memref<16x32xf32, #tpu.memory_space<vmem>>) attributes {dimension_semantics = [#tpu.dimension_semantics<parallel>, #tpu.dimension_semantics<parallel>, #tpu.dimension_semantics<arbitrary>], iteration_bounds = array<i64: 1, 1, 1>, scalar_prefetch = 0 : i64, scratch_operands = 1 : i64, tpu.core_type = #tpu.core_type<tc>, window_params = [{transform_indices = @transform_0, window_bounds = array<i64: 16, 32>}, {transform_indices = @transform_1, window_bounds = array<i64: 32, 32>}, {transform_indices = @transform_2, window_bounds = array<i64: 16, 32>}]} {
    %c0_i32 = arith.constant 0 : i32
    %0 = arith.cmpi eq, %arg2, %c0_i32 : i32
    %1 = arith.extui %0 : i1 to i32
    %c0_i32_0 = arith.constant 0 : i32
    %2 = arith.cmpi ne, %1, %c0_i32_0 : i32
    scf.if %2 {
      %cst_10 = arith.constant 0.000000e+00 : f32
      %12 = vector.broadcast %cst_10 : f32 to vector<16x32xf32>
      %c0_11 = arith.constant 0 : index
      %c0_12 = arith.constant 0 : index
      %13 = vector.load %arg6[%c0_11, %c0_12] : memref<16x32xf32, #tpu.memory_space<vmem>>, vector<16x32xf32>
      tpu.vector_store %arg6[%c0_11, %c0_12], %12 {strides = array<i32>} : memref<16x32xf32, #tpu.memory_space<vmem>>, vector<16x32xf32>,
    } else {
    }
    %c0 = arith.constant 0 : index
    %c0_1 = arith.constant 0 : index
    %3 = vector.load %arg6[%c0, %c0_1] : memref<16x32xf32, #tpu.memory_space<vmem>>, vector<16x32xf32>
    %c0_2 = arith.constant 0 : index
    %c0_3 = arith.constant 0 : index
    %4 = vector.load %arg3[%c0_2, %c0_3] : memref<16x32xf32, #tpu.memory_space<vmem>>, vector<16x32xf32>
    %c0_4 = arith.constant 0 : index
    %c0_5 = arith.constant 0 : index
    %5 = vector.load %arg4[%c0_4, %c0_5] : memref<32x32xf32, #tpu.memory_space<vmem>>, vector<32x32xf32>
    %cst = arith.constant dense<0.000000e+00> : vector<16x32xf32>
    %6 = tpu.matmul %4, %5, %cst {dimension_numbers = #tpu.dot_dimension_numbers<[1], [0], [0], [1], [0, 0, 1, 1], [], []>} : vector<16x32xf32>, vector<32x32xf32>, vector<16x32xf32> -> vector<16x32xf32>
    %7 = arith.addf %3, %6 : vector<16x32xf32>
    %c0_6 = arith.constant 0 : index
    %c0_7 = arith.constant 0 : index
    %8 = vector.load %arg6[%c0_6, %c0_7] : memref<16x32xf32, #tpu.memory_space<vmem>>, vector<16x32xf32>
    tpu.vector_store %arg6[%c0_6, %c0_7], %7 {strides = array<i32>} : memref<16x32xf32, #tpu.memory_space<vmem>>, vector<16x32xf32>,
    %c0_i32_8 = arith.constant 0 : i32
    %9 = arith.cmpi eq, %arg2, %c0_i32_8 : i32
    %10 = arith.extui %9 : i1 to i32
    %c0_i32_9 = arith.constant 0 : i32
    %11 = arith.cmpi ne, %10, %c0_i32_9 : i32
    scf.if %11 {
      %c0_10 = arith.constant 0 : index
      %c0_11 = arith.constant 0 : index
      %12 = vector.load %arg6[%c0_10, %c0_11] : memref<16x32xf32, #tpu.memory_space<vmem>>, vector<16x32xf32>
      %c0_12 = arith.constant 0 : index
      %c0_13 = arith.constant 0 : index
      %13 = vector.load %arg5[%c0_12, %c0_13] : memref<16x32xf32, #tpu.memory_space<vmem>>, vector<16x32xf32>
      tpu.vector_store %arg5[%c0_12, %c0_13], %12 {strides = array<i32>} : memref<16x32xf32, #tpu.memory_space<vmem>>, vector<16x32xf32>,
    } else {
    }
    return
  }
  func.func @transform_0(%arg0: i32, %arg1: i32, %arg2: i32) -> (i32, i32) {
    %c0_i32 = arith.constant 0 : i32
    return %arg0, %arg2 : i32, i32
  }
  func.func @transform_1(%arg0: i32, %arg1: i32, %arg2: i32) -> (i32, i32) {
    %c0_i32 = arith.constant 0 : i32
    return %arg2, %arg1 : i32, i32
  }
  func.func @transform_2(%arg0: i32, %arg1: i32, %arg2: i32) -> (i32, i32) {
    %c0_i32 = arith.constant 0 : i32
    return %arg0, %arg1 : i32, i32
  }
}

</mosaic_0001>

<bundles_post_ra>
// kernel: tpu_custom_call.1
= control target key start
LH: loop header
LB: loop body
LE: loop exit
PB: predicated region body
PF: predicated region fallthrough
CT: control target
= control target key end

     0   :  { %7 = vsyncpa [#allocation4], 0  ;;  %s345_s0 = inlined_call_operand.hbm [shape: f32[16,32], index: 0, kind: input, shape index: {}]   ;;  %s346_s1 = inlined_call_operand.hbm [shape: f32[32,32], index: 1, kind: input, shape index: {}]   ;;  %s347_s2 = inlined_call_operand.hbm [shape: f32[16,32], index: 2, kind: output, shape index: {}]  }
   0x1   :  { %8 = vsyncpa [#allocation7], 0 }
   0x2   :  { %9 = vsyncpa [#allocation5], 0  ;;  %s271_s9 = smov [#allocation3]   ;;  %s199_s13 = scalar_lea.hbm %s345_s0, 256 }
   0x3   :  { %s15_s10 = sshll.u32 %s271_s9, 4  ;;  %p200_p0 = scmp.ne.s32.totalorder %s345_s0, %s199_s13  ;;  %s16_s10 = int_to_ptr.vmem [resolvable:$true] %s15_s10 }
   0x4   :  { %p203_p1 = scmp.lt.u32.totalorder %s199_s13, %s345_s0 }
   0x6   :  { %p205_p2 = pnand %p203_p1, %p200_p0 }
   0x8   :  { %208 = shalt.err (!%p205_p2)
}
   0x9   :  { %s209_s18 = scalar_lea.vmem %s16_s10, 256  ;;  %p214_p4 = scmp.lt.s32.totalorder %s16_s10, %s16_s10 }
   0xa   :  { %p210_p3 = scmp.ne.s32.totalorder %s16_s10, %s209_s18  ;;  %p215_p5 = scmp.lt.s32.totalorder %s209_s18, %s209_s18 }
   0xc   :  { %p216_p6 = por %p215_p5, %p214_p4 }
   0xe   :  { %p217_p7 = pnand %p216_p6, %p210_p3 }
  0x10   :  { %220 = shalt.err (!%p217_p7)
}
  0x11   :  { %s272_s19 = smov 128   ;;  %s273_s20 = smov 8  }
  0x12   :  { %21 = dma.hbm_to_vmem [thread:$0]  %s345_s0, 256, %s16_s10, [#allocation4], %s272_s19, %s272_s19, %s273_s20  }
  0x13   :  { %s274_s23 = smov [#allocation6]   ;;  %s221_s27 = scalar_lea.hbm %s346_s1, 512 }
  0x14   :  { %s27_s24 = sshll.u32 %s274_s23, 4  ;;  %p222_p8 = scmp.ne.s32.totalorder %s346_s1, %s221_s27  ;;  %s28_s24 = int_to_ptr.vmem [resolvable:$true] %s27_s24 }
  0x15   :  { %p225_p9 = scmp.lt.u32.totalorder %s221_s27, %s346_s1 }
  0x17   :  { %p227_p10 = pnand %p225_p9, %p222_p8 }
  0x19   :  { %230 = shalt.err (!%p227_p10)
}
  0x1a   :  { %s231_s4 = scalar_lea.vmem %s28_s24, 512  ;;  %p236_p12 = scmp.lt.s32.totalorder %s28_s24, %s28_s24 }
  0x1b   :  { %p232_p11 = scmp.ne.s32.totalorder %s28_s24, %s231_s4  ;;  %p237_p13 = scmp.lt.s32.totalorder %s231_s4, %s231_s4 }
  0x1d   :  { %p238_p0 = por %p237_p13, %p236_p12 }
  0x1f   :  { %p239_p1 = pnand %p238_p0, %p232_p11 }
  0x21   :  { %242 = shalt.err (!%p239_p1)
}
  0x22   :  { %33 = dma.hbm_to_vmem [thread:$0]  %s346_s1, 512, %s28_s24, [#allocation7], %s272_s19, %s272_s19, %s273_s20  }
  0x23   :  { %265 = dma.done.wait [#allocation4], 256  }
  0x24   :  { %266 = vsyncadd [#allocation4], 4294967040 }
  0x25   :  { %267 = dma.done.wait [#allocation7], 512  }
  0x26   :  { %268 = vsyncadd [#allocation7], 4294966784  ;;  %vm44_vm0 = vcmask 261120   ;;  %v275_v0 = vmov 0.0   ;;  %v51_v1 = vld [vmem:[#allocation6] sm:$0xff]  ;;  %v52_v2 = vld [vmem:[#allocation6 + $0x8] sm:$0xff] }
  0x27   :  { %46 = vst.msk [vmem:[#allocation2 + $0x8] sm:$0xff] %vm44_vm0, %v275_v0  ;;  %45 = vst.msk [vmem:[#allocation2] sm:$0xff] %vm44_vm0, %v275_v0  ;;  %v53_v3 = vld [vmem:[#allocation6 + $0x10] sm:$0xff]  ;;  %v185_v4 = vpack.c.bf16 %v52_v2, %v51_v1  ;;  %v54_v5 = vld [vmem:[#allocation6 + $0x18] sm:$0xff]  ;;  %s276_s1 = smov [#allocation8]  }
  0x28   :  { %v49_v6 = vld [vmem:[#allocation3] sm:$0xff]  ;;  %v189_v7 = vpack.c.bf16 %v54_v5, %v53_v3  ;;  %v50_v8 = vld [vmem:[#allocation3 + $0x8] sm:$0xff]  ;;  %s153_s6 = sshll.u32 %s276_s1, 4  ;;  %s154_s6 = int_to_ptr.vmem [resolvable:$true] %s153_s6 }
  0x29   :  { %182 = vmatprep.mubr.msk.f32.mxu0 %vm44_vm0, %v49_v6  ;;  %186 = vmatprep.subr.bf16.mxu0 %v185_v4  ;;  %s243_s7 = scalar_lea.vmem %s154_s6, 256  ;;  %p248_p3 = scmp.lt.s32.totalorder %s154_s6, %s154_s6 }
  0x2a   :  { %188 = vmatpush3.bf16.msra.mxu0 %v185_v4  ;;  %p244_p2 = scmp.ne.s32.totalorder %s154_s6, %s243_s7  ;;  %p249_p4 = scmp.lt.s32.totalorder %s243_s7, %s243_s7 }
  0x2b   :  { %190 = vmatprep.subr.bf16.mxu0 %v189_v7 }
  0x2c   :  { %p250_p5 = por %p249_p4, %p248_p3 }
  0x2e   :  { %192 = vmatpush3.bf16.msra.mxu0 %v189_v7  ;;  %v48_v9 = vld [vmem:[#allocation2 + $0x8] sm:$0xff]  ;;  %v47_v10 = vld [vmem:[#allocation2] sm:$0xff]  ;;  %p251_p6 = pnand %p250_p5, %p244_p2 }
  0x31   :  { %183 = vmatmul.mubr.msk.f32.vlgmr.msra.gmra.mrb[0].mxu0 %vm44_vm0, %v50_v8 }
 0x104   :  { %v184_v11 = vpop.f32.mrb[0].mxu0 }
 0x105   :  { %v138_v12 = vadd.f32 %v184_v11, %v48_v9  ;;  %v128_v13 = vpop.f32.mrb[1].mxu0 }
 0x106   :  { %v137_v14 = vadd.f32 %v128_v13, %v47_v10 }
 0x107   :  { %140 = vst.msk [vmem:[#allocation2 + $0x8] sm:$0xff] %vm44_vm0, %v138_v12 }
 0x108   :  { %139 = vst.msk [vmem:[#allocation2] sm:$0xff] %vm44_vm0, %v137_v14 }
 0x10e   :  { %v145_v15 = vld [vmem:[#allocation2 + $0x8] sm:$0xff] }
 0x10f   :  { %v144_v16 = vld [vmem:[#allocation2] sm:$0xff]  ;;  %147 = vst.msk [vmem:[#allocation8 + $0x8] sm:$0xff] %vm44_vm0, %v145_v15 }
 0x110   :  { %146 = vst.msk [vmem:[#allocation8] sm:$0xff] %vm44_vm0, %v144_v16 }
 0x111   :  { %254 = shalt.err (!%p251_p6)
}
 0x112   :  { %s255_s10 = scalar_lea.hbm %s347_s2, 256 }
 0x113   :  { %p256_p7 = scmp.ne.s32.totalorder %s347_s2, %s255_s10  ;;  %p259_p8 = scmp.lt.u32.totalorder %s255_s10, %s347_s2 }
 0x115   :  { %p261_p9 = pnand %p259_p8, %p256_p7 }
 0x117   :  { %264 = shalt.err (!%p261_p9)
}
 0x118   :  { %159 = dma.vmem_to_hbm [thread:$0]  %s154_s6, 256, %s347_s2, [#allocation5], %s272_s19, %s272_s19, %s273_s20  }
 0x119   :  { %269 = dma.done.wait [#allocation5], 256  }
 0x11a   :  { %270 = vsyncadd [#allocation5], 4294967040 }
 0x11b   :  { %163 = vsyncpa [#allocation4], 1 }
 0x11c   :  { %164 = vsyncpa [#allocation7], 1 }
 0x11d   :  { %165 = vsyncpa [#allocation5], 1 }

</bundles_post_ra>
